<compile_context>
chip_gen: v5e
topology: v5e:2x2
jax: 0.10.0
libtpu: 0.0.40
codegen_flags: <defaults>
</compile_context>

<pallas_src>
import math

import jax
import jax.numpy as jnp
from jax.experimental import pallas as pl
from jax.experimental.pallas import tpu as pltpu


def make_pe_table(d_model: int, max_len: int = 5000, dtype=jnp.float32):
    """Deterministic sin/cos positional-encoding table, shape (max_len, d_model)."""
    position = jnp.arange(0, max_len, dtype=jnp.float32)[:, None]            # (L, 1)
    div_term = jnp.exp(
        jnp.arange(0, d_model, 2, dtype=jnp.float32) * (-math.log(10000.0) / d_model)
    )                                                                          # (D/2,)
    angles = position * div_term                                               # (L, D/2)
    pe = jnp.zeros((max_len, d_model), dtype=jnp.float32)
    pe = pe.at[:, 0::2].set(jnp.sin(angles))
    pe = pe.at[:, 1::2].set(jnp.cos(angles))
    return pe.astype(dtype)


def _add_pe_kernel(x_ref, pe_ref, o_ref):
    # x_ref / o_ref: (TB, TN) tile of the flattened (B, S*D) activations.
    # pe_ref:        (1, TN) matching column slice of the flattened pe table,
    #                broadcast across the batch sublanes (cheap VPU work that is
    #                completely hidden under the HBM traffic).
    o_ref[...] = x_ref[...] + pe_ref[...]
    # TODO(synk): train-mode nn.Dropout (inverted-dropout mask) is not applied;
    # eval-mode dropout is the identity, which is what is reproduced here.


def positional_encoding_forward(x, pe_table):
    """x: (B, S, D); pe_table: (max_len, D). Returns x + pe[:S] (eval-mode dropout)."""
    B, S, D = x.shape
    SD = S * D

    # Pre-cast pe to x's dtype in the wrapper: halves pe DMA bytes for bf16
    # inputs and keeps the in-kernel add entirely in x.dtype.
    pe2 = pe_table[:S, :].astype(x.dtype).reshape(1, SD)
    x2 = x.reshape(B, SD)

    itemsize = jnp.dtype(x.dtype).itemsize

    # Sublane (batch) tile.
    TB = B if B <= 8 else 8

    # Lane (S*D) tile: ~1 MiB per x tile, multiple of 128 lanes.  If S*D is not
    # a multiple of 128 the block must span the full lane dim (Pallas rule), so
    # we shrink the batch tile instead to bound VMEM.
    target_tile_bytes = 1 << 20
    if SD % 128 == 0:
        cols_cap = max(128, ((target_tile_bytes // max(1, TB * itemsize)) // 128) * 128)
        TN = min(SD, cols_cap)
    else:
        TN = SD
        while TB > 1 and TB * TN * itemsize > (4 << 20):
            TB = max(1, TB // 2)

    grid = (pl.cdiv(B, TB), pl.cdiv(SD, TN))

    out2 = pl.pallas_call(
        _add_pe_kernel,
        out_shape=jax.ShapeDtypeStruct((B, SD), x.dtype),
        grid_spec=pltpu.PrefetchScalarGridSpec(
            num_scalar_prefetch=0,
            grid=grid,
            in_specs=[
                pl.BlockSpec((TB, TN), lambda i, j: (i, j)),   # x tile
                pl.BlockSpec((1, TN), lambda i, j: (0, j)),    # pe tile (same cols)
            ],
            out_specs=pl.BlockSpec((TB, TN), lambda i, j: (i, j)),
        ),
        compiler_params=pltpu.CompilerParams(
            dimension_semantics=("parallel", "parallel"),
        ),
        input_output_aliases={0: 0},
    )(x2, pe2)

    return out2.reshape(B, S, D)


if __name__ == "__main__":
    # Small shapes consistent with the module: batch=2, seq=8, d_model=32.
    B, S, D = 2, 8, 32
    key = jax.random.PRNGKey(0)
    x = jax.random.normal(key, (B, S, D), dtype=jnp.float32)

    pe_table = make_pe_table(d_model=D, max_len=5000)

    # Reference in plain JAX (computed before the kernel call).
    ref = x + pe_table[None, :S, :]

    out = positional_encoding_forward(x, pe_table)
    out = jax.block_until_ready(out)

    assert out.shape == (B, S, D)
    assert jnp.allclose(out, ref, atol=1e-6, rtol=1e-6), "mismatch vs reference"

    print("KERNEL_OK")
</pallas_src>

<mosaic_0001>
module attributes {stable_mosaic.version = 11 : i64} {
  func.func @_add_pe_kernel(%arg0: i32, %arg1: i32, %arg2: memref<2x256xf32, #tpu.memory_space<vmem>>, %arg3: memref<1x256xf32, #tpu.memory_space<vmem>>, %arg4: memref<2x256xf32, #tpu.memory_space<vmem>>) attributes {dimension_semantics = [#tpu.dimension_semantics<parallel>, #tpu.dimension_semantics<parallel>], iteration_bounds = array<i64: 1, 1>, scalar_prefetch = 0 : i64, scratch_operands = 0 : i64, tpu.core_type = #tpu.core_type<tc>, window_params = [{transform_indices = @transform_0, window_bounds = array<i64: 2, 256>}, {transform_indices = @transform_1, window_bounds = array<i64: 1, 256>}, {transform_indices = @transform_2, window_bounds = array<i64: 2, 256>}]} {
    %c0 = arith.constant 0 : index
    %c0_0 = arith.constant 0 : index
    %0 = vector.load %arg2[%c0, %c0_0] : memref<2x256xf32, #tpu.memory_space<vmem>>, vector<2x256xf32>
    %c0_1 = arith.constant 0 : index
    %c0_2 = arith.constant 0 : index
    %1 = vector.load %arg3[%c0_1, %c0_2] : memref<1x256xf32, #tpu.memory_space<vmem>>, vector<1x256xf32>
    %2 = vector.broadcast %1 : vector<1x256xf32> to vector<2x256xf32>
    %3 = arith.addf %0, %2 : vector<2x256xf32>
    %c0_3 = arith.constant 0 : index
    %c0_4 = arith.constant 0 : index
    %4 = vector.load %arg4[%c0_3, %c0_4] : memref<2x256xf32, #tpu.memory_space<vmem>>, vector<2x256xf32>
    tpu.vector_store %arg4[%c0_3, %c0_4], %3 {strides = array<i32>} : memref<2x256xf32, #tpu.memory_space<vmem>>, vector<2x256xf32>,
    return
  }
  func.func @transform_0(%arg0: i32, %arg1: i32) -> (i32, i32) {
    %c0_i32 = arith.constant 0 : i32
    return %arg0, %arg1 : i32, i32
  }
  func.func @transform_1(%arg0: i32, %arg1: i32) -> (i32, i32) {
    %c0_i32 = arith.constant 0 : i32
    %c0_i32_0 = arith.constant 0 : i32
    return %c0_i32, %arg1 : i32, i32
  }
  func.func @transform_2(%arg0: i32, %arg1: i32) -> (i32, i32) {
    %c0_i32 = arith.constant 0 : i32
    return %arg0, %arg1 : i32, i32
  }
}

</mosaic_0001>

<bundles_post_ra>
// kernel: tpu_custom_call.1
= control target key start
LH: loop header
LB: loop body
LE: loop exit
PB: predicated region body
PF: predicated region fallthrough
CT: control target
= control target key end

     0   :  { %7 = vsyncpa [#allocation3], 0  ;;  %s134_s0 = inlined_call_operand.hbm [shape: f32[2,256], index: 0, kind: input, shape index: {}, may-alias: {0,2}]   ;;  %s135_s1 = inlined_call_operand.vmem [shape: f32[1,256], index: 1, kind: input, shape index: {}]   ;;  %s136_s2 = inlined_call_operand.hbm [shape: f32[2,256], index: 2, kind: output, shape index: {}, may-alias: {0,2}]  }
   0x1   :  { %8 = vsyncpa [#allocation4], 0  ;;  %s14_s11 = sshll.u32 %s134_s0, 4  ;;  %s108_s12 = smov [#allocation2]   ;;  %s15_s11 = int_to_ptr.hbm [resolvable:$true] %s14_s11 }
   0x2   :  { %s16_s13 = sshll.u32 %s108_s12, 4  ;;  %s17_s13 = int_to_ptr.vmem [resolvable:$true] %s16_s13 }
   0x3   :  { %19 = dma.hbm_to_vmem [thread:$0]  %s15_s11, 64, %s17_s13, [#allocation3]  }
   0x4   :  { %104 = dma.done.wait [#allocation3], 64  }
   0x5   :  { %105 = vsyncadd [#allocation3], 4294967232  ;;  %v27_v0 = vld [vmem:[%s135_s1] sm:$0x3]  ;;  %vm32_vm0 = vcmask 1041408   ;;  %s109_s16 = smov [#allocation5]  }
   0x6   :  { %v29_v1 = vperm.slane %v27_v0, 0  ;;  %v30_v2 = vperm.slane %v27_v0, 1  ;;  %v26_v3 = vld [vmem:[#allocation2] sm:$0xf]  ;;  %s42_s17 = sshll.u32 %s109_s16, 4  ;;  %s44_s19 = sshll.u32 %s136_s2, 4  ;;  %s43_s17 = int_to_ptr.vmem [resolvable:$true] %s42_s17  ;;  %s45_s19 = int_to_ptr.hbm [resolvable:$true] %s44_s19 }
   0x8   :  { %v31_v4 = vrot.slane %v30_v2, 6 }
   0xa   :  { %v33_v5 = vsel %vm32_vm0, %v29_v1, %v31_v4 }
   0xb   :  { %v35_v6 = vadd.f32 %v33_v5, %v26_v3 }
   0xd   :  { %36 = vst [vmem:[#allocation5] sm:$0xf] %v35_v6 }
   0xe   :  { %47 = dma.vmem_to_hbm [thread:$0]  %s43_s17, 64, %s45_s19, [#allocation4]  }
   0xf   :  { %106 = dma.done.wait [#allocation4], 64  }
  0x10   :  { %107 = vsyncadd [#allocation4], 4294967232 }
  0x11   :  { %52 = vsyncpa [#allocation3], 1 }
  0x12   :  { %53 = vsyncpa [#allocation4], 1 }

</bundles_post_ra>
